<compile_context>
chip_gen: v6e
topology: v6e:2x2x1
jax: 0.10.0
libtpu: 0.0.40
codegen_flags: <defaults>
</compile_context>

<pallas_src>
import functools

import jax
import jax.numpy as jnp
from jax.experimental import pallas as pl
from jax.experimental.pallas import tpu as pltpu

_EPS = 1e-5


# --------------------------------- kernel -----------------------------------
def _residual_kernel(*refs, H, pack, has_conv3):
    if has_conv3:
        x_ref, w1_ref, w2_ref, p_ref, gb_ref, w3_ref, out_ref = refs
    else:
        x_ref, w1_ref, w2_ref, p_ref, gb_ref, out_ref = refs

    R = x_ref.shape[0]            # N * H / pack   slab rows
    HP = H // pack                # slab rows per image
    inv_r = 1.0 / float(R)

    x = x_ref[...]                # (R, pack*W*Cin) lane-dense f32 slab
    gb = gb_ref[...]              # (4|5, L): g1, be1, g2, be2[, b3]
    g1, be1 = gb[0:1, :], gb[1:2, :]
    g2, be2 = gb[2:3, :], gb[3:4, :]

    # Slab-row index within each image; boolean kh-boundary masks (they also
    # kill the cross-image leakage of the cyclic rolls).
    hr = jax.lax.broadcasted_iota(jnp.int32, (R, 1), 0) % HP
    mask_top = hr > 0           # slab row above is inside the same image
    mask_bot = hr < HP - 1      # slab row below is inside the same image

    def conv3x3(a, w_ref):
        # Whole 3x3 conv = ONE bf16 MXU matmul: the kw taps, the width zero
        # padding and the row-pack structure are folded into the weight; the
        # kh taps are fused by concatenating [above | mid | below] along the
        # lane (K) axis, with the boundary masks applied while building it.
        a_up = jnp.where(mask_top, pltpu.roll(a, shift=1, axis=0), 0.0)
        a_dn = jnp.where(mask_bot, pltpu.roll(a, shift=R - 1, axis=0), 0.0)
        acat = jnp.concatenate([a_up, a, a_dn], axis=1).astype(jnp.bfloat16)
        return jnp.dot(acat, w_ref[...], preferred_element_type=jnp.float32)

    two = jax.lax.broadcasted_iota(jnp.int32, (2, 1), 0)   # [[0], [1]]

    def batchnorm(acc, g, be):
        # One-pass batch-statistics BN folded into a single FMA per element.
        # Per-channel reduce + broadcast over the pack*W interleaved lanes is
        # ONE tiny matmul of the stacked [E[x]; E[x^2]] against P.
        s1 = jnp.sum(acc, axis=0, keepdims=True) * inv_r           # (1, L)
        s2 = jnp.sum(acc * acc, axis=0, keepdims=True) * inv_r     # (1, L)
        # Stack to (2, L) via broadcast + select (no sublane concat needed).
        st = jnp.dot(jnp.where(two == 0, s1, s2), p_ref[...],
                     preferred_element_type=jnp.float32)            # (2, L)
        mu, ex2 = st[0:1, :], st[1:2, :]
        scale = g * jax.lax.rsqrt(ex2 - mu * mu + _EPS)
        return scale * acc + (be - scale * mu)

    # conv1 -> bn1 -> relu   (conv bias b1 cancels exactly under batch-stat BN)
    y = jnp.maximum(batchnorm(conv3x3(x, w1_ref), g1, be1), 0.0)

    # conv2 -> bn2           (conv bias b2 cancels as well)
    y2 = batchnorm(conv3x3(y, w2_ref), g2, be2)

    # Shortcut: identity (Cin == Cm) or 1x1 conv = block-diag matmul + bias.
    if has_conv3:
        res = jnp.dot(x.astype(jnp.bfloat16), w3_ref[...],
                      preferred_element_type=jnp.float32) + gb[4:5, :]
    else:
        res = x

    out_ref[...] = jnp.maximum(y2 + res, 0.0)


# ----------------------------- weight preparation ----------------------------
def _banded_3x3_weight(w_hwio, width):
    """(3,3,Ci,Co) HWIO -> (3, width*Ci, width*Co) banded per-kh matrices.

    big[kh][wi*Ci+ci, wo*Co+co] = w[kh, wi-wo+1, ci, co] when 0 <= wi-wo+1 < 3,
    else 0: the kw taps and the width zero-padding are folded into the weight.
    """
    KH, KW, CI, CO = w_hwio.shape
    d = jnp.arange(width)[:, None] - jnp.arange(width)[None, :] + 1  # wi-wo+1
    sel = (d[:, :, None] == jnp.arange(KW)[None, None, :]).astype(w_hwio.dtype)
    big = jnp.einsum("xyk,hkio->hxiyo", sel, w_hwio)   # (kh, wi, ci, wo, co)
    return big.reshape(KH, width * CI, width * CO)


def _fused_conv3x3_weight(w_hwio, width, pack):
    """(3,3,Ci,Co) -> single (3*pack*width*Ci, pack*width*Co) matmul weight.

    Rows are [M_up; M_mid; M_dn] so the whole 3x3 conv on the row-packed,
    lane-dense slab is one dot against [a_up | a | a_dn]."""
    band = _banded_3x3_weight(w_hwio, width)            # (3, W*Ci, W*Co)
    ci, co = w_hwio.shape[2], w_hwio.shape[3]
    li, lo = width * ci, width * co
    zeros = jnp.zeros((li, lo), w_hwio.dtype)

    def tap(sel):
        rows = []
        for pi in range(pack):
            cols = [sel(pi, po) for po in range(pack)]
            rows.append(jnp.concatenate(
                [c if c is not None else zeros for c in cols], axis=1))
        return jnp.concatenate(rows, axis=0)

    m_up = tap(lambda pi, po: band[0] if (pi == pack - 1 and po == 0) else None)
    m_mid = tap(lambda pi, po: band[0] if pi == po - 1 else
                               band[1] if pi == po else
                               band[2] if pi == po + 1 else None)
    m_dn = tap(lambda pi, po: band[2] if (pi == 0 and po == pack - 1) else None)
    return jnp.concatenate([m_up, m_mid, m_dn], axis=0)


def _blockdiag_1x1_weight(w_io, width):
    """(Ci,Co) -> block-diagonal (width*Ci, width*Co) for the 1x1 shortcut."""
    CI, CO = w_io.shape
    eye = jnp.eye(width, dtype=w_io.dtype)
    return jnp.einsum("xy,io->xiyo", eye, w_io).reshape(width * CI, width * CO)


def _channel_mean_matrix(width, c):
    """P with P[wi*c+c1, wo*c+c2] = (c1==c2)/width: right-multiplying a (k, L)
    per-lane statistic by P averages it over the width-interleave and
    broadcasts the per-channel result back to every lane in one matmul."""
    ones = jnp.full((width, width), 1.0 / width, jnp.float32)
    return jnp.einsum("xy,io->xiyo", ones,
                      jnp.eye(c, dtype=jnp.float32)).reshape(width * c,
                                                             width * c)


def _pick_row_pack(H, W, cin, cm):
    """Smallest power-of-two rows-per-slab-row making both lane widths a
    multiple of 128 (lane-dense stores)."""
    p = 1
    while p < H and (((p * W * cin) % 128) or ((p * W * cm) % 128)):
        p *= 2
    if H % p != 0:
        p = 1
    return p


# --------------------------------- wrapper -----------------------------------
def residual_pallas(x_nhwc, params, use_1x1conv):
    N, H, W, Cin = x_nhwc.shape
    Cm = params["w1"].shape[-1]
    if not use_1x1conv:
        assert Cin == Cm, "identity shortcut requires input_channels == num_channels"

    pack = _pick_row_pack(H, W, Cin, Cm)
    R = N * H // pack
    Lin = pack * W * Cin
    Lm = pack * W * Cm

    # Lane-dense, row-packed activation slab: row = n*(H/pack) + h//pack,
    # lane = (h%pack)*W*Cin + w*Cin + c  (a plain reshape in this order).
    x2d = x_nhwc.astype(jnp.float32).reshape(R, Lin)

    # bf16 matmul weights (MXU-native); constants for BN stay f32.
    w1cat = _fused_conv3x3_weight(params["w1"].astype(jnp.float32),
                                  W, pack).astype(jnp.bfloat16)   # (3*Lin, Lm)
    w2cat = _fused_conv3x3_weight(params["w2"].astype(jnp.float32),
                                  W, pack).astype(jnp.bfloat16)   # (3*Lm, Lm)
    Pmat = _channel_mean_matrix(pack * W, Cm)                     # (Lm, Lm) f32

    # Per-channel BN params pre-tiled to the lane layout (lane = (p*W+w)*Cm+c).
    # Conv biases b1/b2 are omitted: batch-statistics BN cancels them exactly.
    gb_rows = [jnp.tile(params["g1"], pack * W), jnp.tile(params["be1"], pack * W),
               jnp.tile(params["g2"], pack * W), jnp.tile(params["be2"], pack * W)]
    if use_1x1conv:
        gb_rows.append(jnp.tile(params["b3"], pack * W))
    gb = jnp.stack(gb_rows, axis=0).astype(jnp.float32)            # (4|5, Lm)

    inputs = [x2d, w1cat, w2cat, Pmat, gb]
    if use_1x1conv:
        inputs.append(_blockdiag_1x1_weight(
            params["w3"].reshape(Cin, Cm).astype(jnp.float32),
            pack * W).astype(jnp.bfloat16))                        # (Lin, Lm)

    kernel = functools.partial(_residual_kernel, H=H, pack=pack,
                               has_conv3=use_1x1conv)

    # TODO(synk): at real ResNet sizes, replace grid=(1,) with a row-block grid
    #             ("parallel" for v7x megacore), streamed BN stats, and
    #             pl.Buffered(1) on the resident weight/P/gb specs.
    out2d = pl.pallas_call(
        kernel,
        out_shape=jax.ShapeDtypeStruct((R, Lm), jnp.float32),
        grid_spec=pltpu.PrefetchScalarGridSpec(
            num_scalar_prefetch=0,
            grid=(1,),
            in_specs=[pl.BlockSpec(a.shape, lambda i: (0, 0)) for a in inputs],
            out_specs=pl.BlockSpec((R, Lm), lambda i: (0, 0)),
        ),
        compiler_params=pltpu.CompilerParams(
            dimension_semantics=("arbitrary",)),
    )(*inputs)

    return out2d.reshape(N, H, W, Cm)


# ----------------------------- pure-JAX reference ---------------------------
def residual_ref(x_nhwc, params, use_1x1conv):
    def conv(x, w, b, pad):
        y = jax.lax.conv_general_dilated(
            x, w, window_strides=(1, 1), padding=[(pad, pad), (pad, pad)],
            dimension_numbers=("NHWC", "HWIO", "NHWC"))
        return y + b.reshape(1, 1, 1, -1)

    def bn(y, g, be):
        mu = y.mean((0, 1, 2), keepdims=True)
        var = ((y - mu) ** 2).mean((0, 1, 2), keepdims=True)
        return (g.reshape(1, 1, 1, -1) * (y - mu) / jnp.sqrt(var + _EPS)
                + be.reshape(1, 1, 1, -1))

    y = jax.nn.relu(bn(conv(x_nhwc, params["w1"], params["b1"], 1),
                       params["g1"], params["be1"]))
    y = bn(conv(y, params["w2"], params["b2"], 1), params["g2"], params["be2"])
    if use_1x1conv:
        x_nhwc = conv(x_nhwc, params["w3"], params["b3"], 0)
    return jax.nn.relu(y + x_nhwc)


def init_params(key, cin, cm, use_1x1conv):
    ks = jax.random.split(key, 12)
    p = {
        "w1": 0.1 * jax.random.normal(ks[0], (3, 3, cin, cm), jnp.float32),
        "b1": 0.05 * jax.random.normal(ks[1], (cm,), jnp.float32),
        "w2": 0.1 * jax.random.normal(ks[2], (3, 3, cm, cm), jnp.float32),
        "b2": 0.05 * jax.random.normal(ks[3], (cm,), jnp.float32),
        "g1": 1.0 + 0.1 * jax.random.normal(ks[4], (cm,), jnp.float32),
        "be1": 0.1 * jax.random.normal(ks[5], (cm,), jnp.float32),
        "g2": 1.0 + 0.1 * jax.random.normal(ks[6], (cm,), jnp.float32),
        "be2": 0.1 * jax.random.normal(ks[7], (cm,), jnp.float32),
    }
    if use_1x1conv:
        p["w3"] = 0.1 * jax.random.normal(ks[8], (1, 1, cin, cm), jnp.float32)
        p["b3"] = 0.05 * jax.random.normal(ks[9], (cm,), jnp.float32)
    return p


if __name__ == "__main__":
    key = jax.random.PRNGKey(0)
    kx, kp1, kp2 = jax.random.split(key, 3)

    # PyTorch-style NCHW input, transposed to NHWC for the kernel.
    x_nchw = jax.random.normal(kx, (2, 4, 16, 16), jnp.float32)
    x_nhwc = jnp.transpose(x_nchw, (0, 2, 3, 1))

    # Config A: Residual(4, 4, use_1x1conv=False, strides=1)
    pA = init_params(kp1, 4, 4, False)
    outA = jax.block_until_ready(residual_pallas(x_nhwc, pA, False))
    refA = residual_ref(x_nhwc, pA, False)

    # Config B: Residual(4, 8, use_1x1conv=True, strides=1)
    pB = init_params(kp2, 4, 8, True)
    outB = jax.block_until_ready(residual_pallas(x_nhwc, pB, True))
    refB = residual_ref(x_nhwc, pB, True)

    assert outA.shape == (2, 16, 16, 4) and outB.shape == (2, 16, 16, 8)
    # bf16 MXU operands (per perf review) -> tolerance relaxed vs the f32 run;
    # BN statistics / element-wise math remain f32 inside the kernel.
    assert jnp.allclose(outA, refA, rtol=2e-2, atol=2e-2), "config A mismatch"
    assert jnp.allclose(outB, refB, rtol=2e-2, atol=2e-2), "config B mismatch"

    print("KERNEL_OK")
</pallas_src>

<mosaic_0001>
module attributes {stable_mosaic.version = 11 : i64} {
  func.func @_residual_kernel(%arg0: i32, %arg1: memref<16x128xf32, #tpu.memory_space<vmem>>, %arg2: memref<384x128xbf16, #tpu.memory_space<vmem>>, %arg3: memref<384x128xbf16, #tpu.memory_space<vmem>>, %arg4: memref<128x128xf32, #tpu.memory_space<vmem>>, %arg5: memref<4x128xf32, #tpu.memory_space<vmem>>, %arg6: memref<16x128xf32, #tpu.memory_space<vmem>>) attributes {dimension_semantics = [#tpu.dimension_semantics<arbitrary>], iteration_bounds = array<i64: 1>, scalar_prefetch = 0 : i64, scratch_operands = 0 : i64, tpu.core_type = #tpu.core_type<tc>, window_params = [{pipeline_mode = #tpu.pipeline_mode<synchronous>, transform_indices = @transform_0, window_bounds = array<i64: 16, 128>}, {pipeline_mode = #tpu.pipeline_mode<synchronous>, transform_indices = @transform_1, window_bounds = array<i64: 384, 128>}, {pipeline_mode = #tpu.pipeline_mode<synchronous>, transform_indices = @transform_2, window_bounds = array<i64: 384, 128>}, {pipeline_mode = #tpu.pipeline_mode<synchronous>, transform_indices = @transform_3, window_bounds = array<i64: 128, 128>}, {pipeline_mode = #tpu.pipeline_mode<synchronous>, transform_indices = @transform_4, window_bounds = array<i64: 4, 128>}, {pipeline_mode = #tpu.pipeline_mode<synchronous>, transform_indices = @transform_5, window_bounds = array<i64: 16, 128>}]} {
    %c0 = arith.constant 0 : index
    %c0_0 = arith.constant 0 : index
    %0 = vector.load %arg1[%c0, %c0_0] : memref<16x128xf32, #tpu.memory_space<vmem>>, vector<16x128xf32>
    %c0_1 = arith.constant 0 : index
    %c0_2 = arith.constant 0 : index
    %1 = vector.load %arg5[%c0_1, %c0_2] : memref<4x128xf32, #tpu.memory_space<vmem>>, vector<4x128xf32>
    %2 = vector.extract_strided_slice %1 {offsets = [0, 0], sizes = [1, 128], strides = [1, 1]} : vector<4x128xf32> to vector<1x128xf32>
    %3 = vector.extract_strided_slice %1 {offsets = [1, 0], sizes = [1, 128], strides = [1, 1]} : vector<4x128xf32> to vector<1x128xf32>
    %4 = vector.extract_strided_slice %1 {offsets = [2, 0], sizes = [1, 128], strides = [1, 1]} : vector<4x128xf32> to vector<1x128xf32>
    %5 = vector.extract_strided_slice %1 {offsets = [3, 0], sizes = [1, 128], strides = [1, 1]} : vector<4x128xf32> to vector<1x128xf32>
    %6 = tpu.iota {dimensions = array<i32: 0>} : vector<16x1xi32>
    %c8_i32 = arith.constant 8 : i32
    %c0_i32 = arith.constant 0 : i32
    %7 = arith.cmpi eq, %c8_i32, %c0_i32 : i32
    %c1_i32 = arith.constant 1 : i32
    %8 = arith.select %7, %c1_i32, %c8_i32 : i32
    %9 = vector.broadcast %8 : i32 to vector<16x1xi32>
    %10 = arith.remsi %6, %9 : vector<16x1xi32>
    %c0_i32_3 = arith.constant 0 : i32
    %11 = vector.broadcast %c0_i32_3 : i32 to vector<16x1xi32>
    %12 = arith.cmpi ne, %10, %11 : vector<16x1xi32>
    %c0_i32_4 = arith.constant 0 : i32
    %13 = vector.broadcast %c0_i32_4 : i32 to vector<16x1xi32>
    %14 = arith.cmpi slt, %10, %13 : vector<16x1xi32>
    %c0_i32_5 = arith.constant 0 : i32
    %15 = arith.cmpi slt, %8, %c0_i32_5 : i32
    %16 = vector.broadcast %15 : i1 to vector<16x1xi1>
    %17 = vector.broadcast %16 : vector<16x1xi1> to vector<16x1xi1>
    %18 = arith.xori %14, %17 : vector<16x1xi1>
    %19 = arith.andi %18, %12 : vector<16x1xi1>
    %20 = vector.broadcast %8 : i32 to vector<16x1xi32>
    %21 = arith.addi %10, %20 : vector<16x1xi32>
    %22 = arith.select %19, %21, %10 : vector<16x1xi1>, vector<16x1xi32>
    %c0_i32_6 = arith.constant 0 : i32
    %23 = vector.broadcast %c0_i32_6 : i32 to vector<16x1xi32>
    %24 = arith.cmpi sgt, %22, %23 : vector<16x1xi32>
    %c7_i32 = arith.constant 7 : i32
    %25 = vector.broadcast %c7_i32 : i32 to vector<16x1xi32>
    %26 = arith.cmpi slt, %22, %25 : vector<16x1xi32>
    %27 = tpu.iota {dimensions = array<i32: 0>} : vector<2x1xi32>
    %c1_i32_7 = arith.constant 1 : i32
    %28 = tpu.dynamic_rotate %0 by %c1_i32_7 dim 0 : vector<16x128xf32>, i32 -> vector<16x128xf32>
    %cst = arith.constant 0.000000e+00 : f32
    %29 = vector.shape_cast %24 : vector<16x1xi1> to vector<16x1xi1>
    %30 = vector.broadcast %29 : vector<16x1xi1> to vector<16x128xi1>
    %31 = vector.broadcast %cst : f32 to vector<16x128xf32>
    %32 = arith.select %30, %28, %31 : vector<16x128xi1>, vector<16x128xf32>
    %c15_i32 = arith.constant 15 : i32
    %33 = tpu.dynamic_rotate %0 by %c15_i32 dim 0 : vector<16x128xf32>, i32 -> vector<16x128xf32>
    %cst_8 = arith.constant 0.000000e+00 : f32
    %34 = vector.shape_cast %26 : vector<16x1xi1> to vector<16x1xi1>
    %35 = vector.broadcast %34 : vector<16x1xi1> to vector<16x128xi1>
    %36 = vector.broadcast %cst_8 : f32 to vector<16x128xf32>
    %37 = arith.select %35, %33, %36 : vector<16x128xi1>, vector<16x128xf32>
    %38 = tpu.concatenate %32, %0, %37 in 1 : vector<16x128xf32>, vector<16x128xf32>, vector<16x128xf32> -> vector<16x384xf32>
    %39 = arith.truncf %38 : vector<16x384xf32> to vector<16x384xbf16>
    %c0_9 = arith.constant 0 : index
    %c0_10 = arith.constant 0 : index
    %40 = vector.load %arg2[%c0_9, %c0_10] : memref<384x128xbf16, #tpu.memory_space<vmem>>, vector<384x128xbf16>
    %cst_11 = arith.constant dense<0.000000e+00> : vector<16x128xf32>
    %41 = tpu.matmul %39, %40, %cst_11 {dimension_numbers = #tpu.dot_dimension_numbers<[1], [0], [0], [1], [0, 0, 1, 1], [], []>} : vector<16x384xbf16>, vector<384x128xbf16>, vector<16x128xf32> -> vector<16x128xf32>
    %cst_12 = arith.constant dense<0.000000e+00> : vector<128xf32>
    %42 = vector.multi_reduction <add>, %41, %cst_12 [0] : vector<16x128xf32> to vector<128xf32>
    %43 = vector.shape_cast %42 : vector<128xf32> to vector<1x128xf32>
    %cst_13 = arith.constant 6.250000e-02 : f32
    %44 = vector.broadcast %cst_13 : f32 to vector<1x128xf32>
    %45 = arith.mulf %43, %44 : vector<1x128xf32>
    %46 = arith.mulf %41, %41 : vector<16x128xf32>
    %cst_14 = arith.constant dense<0.000000e+00> : vector<128xf32>
    %47 = vector.multi_reduction <add>, %46, %cst_14 [0] : vector<16x128xf32> to vector<128xf32>
    %48 = vector.shape_cast %47 : vector<128xf32> to vector<1x128xf32>
    %cst_15 = arith.constant 6.250000e-02 : f32
    %49 = vector.broadcast %cst_15 : f32 to vector<1x128xf32>
    %50 = arith.mulf %48, %49 : vector<1x128xf32>
    %c0_i32_16 = arith.constant 0 : i32
    %51 = vector.broadcast %c0_i32_16 : i32 to vector<2x1xi32>
    %52 = arith.cmpi eq, %27, %51 : vector<2x1xi32>
    %53 = vector.shape_cast %52 : vector<2x1xi1> to vector<2x1xi1>
    %54 = vector.broadcast %53 : vector<2x1xi1> to vector<2x128xi1>
    %55 = vector.shape_cast %45 : vector<1x128xf32> to vector<1x128xf32>
    %56 = vector.broadcast %55 : vector<1x128xf32> to vector<2x128xf32>
    %57 = vector.shape_cast %50 : vector<1x128xf32> to vector<1x128xf32>
    %58 = vector.broadcast %57 : vector<1x128xf32> to vector<2x128xf32>
    %59 = arith.select %54, %56, %58 : vector<2x128xi1>, vector<2x128xf32>
    %c0_17 = arith.constant 0 : index
    %c0_18 = arith.constant 0 : index
    %60 = vector.load %arg4[%c0_17, %c0_18] : memref<128x128xf32, #tpu.memory_space<vmem>>, vector<128x128xf32>
    %cst_19 = arith.constant dense<0.000000e+00> : vector<2x128xf32>
    %61 = tpu.matmul %59, %60, %cst_19 {dimension_numbers = #tpu.dot_dimension_numbers<[1], [0], [0], [1], [0, 0, 1, 1], [], []>} : vector<2x128xf32>, vector<128x128xf32>, vector<2x128xf32> -> vector<2x128xf32>
    %62 = vector.extract_strided_slice %61 {offsets = [0, 0], sizes = [1, 128], strides = [1, 1]} : vector<2x128xf32> to vector<1x128xf32>
    %63 = vector.extract_strided_slice %61 {offsets = [1, 0], sizes = [1, 128], strides = [1, 1]} : vector<2x128xf32> to vector<1x128xf32>
    %64 = arith.mulf %62, %62 : vector<1x128xf32>
    %65 = arith.subf %63, %64 : vector<1x128xf32>
    %cst_20 = arith.constant 9.99999974E-6 : f32
    %66 = vector.broadcast %cst_20 : f32 to vector<1x128xf32>
    %67 = arith.addf %65, %66 : vector<1x128xf32>
    %68 = math.rsqrt %67 : vector<1x128xf32>
    %69 = arith.mulf %2, %68 : vector<1x128xf32>
    %70 = vector.broadcast %69 : vector<1x128xf32> to vector<16x128xf32>
    %71 = arith.mulf %70, %41 : vector<16x128xf32>
    %72 = arith.mulf %69, %62 : vector<1x128xf32>
    %73 = arith.subf %3, %72 : vector<1x128xf32>
    %74 = vector.broadcast %73 : vector<1x128xf32> to vector<16x128xf32>
    %75 = arith.addf %71, %74 : vector<16x128xf32>
    %cst_21 = arith.constant 0.000000e+00 : f32
    %76 = vector.broadcast %cst_21 : f32 to vector<16x128xf32>
    %77 = arith.maximumf %75, %76 : vector<16x128xf32>
    %c1_i32_22 = arith.constant 1 : i32
    %78 = tpu.dynamic_rotate %77 by %c1_i32_22 dim 0 : vector<16x128xf32>, i32 -> vector<16x128xf32>
    %cst_23 = arith.constant 0.000000e+00 : f32
    %79 = vector.shape_cast %24 : vector<16x1xi1> to vector<16x1xi1>
    %80 = vector.broadcast %79 : vector<16x1xi1> to vector<16x128xi1>
    %81 = vector.broadcast %cst_23 : f32 to vector<16x128xf32>
    %82 = arith.select %80, %78, %81 : vector<16x128xi1>, vector<16x128xf32>
    %c15_i32_24 = arith.constant 15 : i32
    %83 = tpu.dynamic_rotate %77 by %c15_i32_24 dim 0 : vector<16x128xf32>, i32 -> vector<16x128xf32>
    %cst_25 = arith.constant 0.000000e+00 : f32
    %84 = vector.shape_cast %26 : vector<16x1xi1> to vector<16x1xi1>
    %85 = vector.broadcast %84 : vector<16x1xi1> to vector<16x128xi1>
    %86 = vector.broadcast %cst_25 : f32 to vector<16x128xf32>
    %87 = arith.select %85, %83, %86 : vector<16x128xi1>, vector<16x128xf32>
    %88 = tpu.concatenate %82, %77, %87 in 1 : vector<16x128xf32>, vector<16x128xf32>, vector<16x128xf32> -> vector<16x384xf32>
    %89 = arith.truncf %88 : vector<16x384xf32> to vector<16x384xbf16>
    %c0_26 = arith.constant 0 : index
    %c0_27 = arith.constant 0 : index
    %90 = vector.load %arg3[%c0_26, %c0_27] : memref<384x128xbf16, #tpu.memory_space<vmem>>, vector<384x128xbf16>
    %cst_28 = arith.constant dense<0.000000e+00> : vector<16x128xf32>
    %91 = tpu.matmul %89, %90, %cst_28 {dimension_numbers = #tpu.dot_dimension_numbers<[1], [0], [0], [1], [0, 0, 1, 1], [], []>} : vector<16x384xbf16>, vector<384x128xbf16>, vector<16x128xf32> -> vector<16x128xf32>
    %cst_29 = arith.constant dense<0.000000e+00> : vector<128xf32>
    %92 = vector.multi_reduction <add>, %91, %cst_29 [0] : vector<16x128xf32> to vector<128xf32>
    %93 = vector.shape_cast %92 : vector<128xf32> to vector<1x128xf32>
    %cst_30 = arith.constant 6.250000e-02 : f32
    %94 = vector.broadcast %cst_30 : f32 to vector<1x128xf32>
    %95 = arith.mulf %93, %94 : vector<1x128xf32>
    %96 = arith.mulf %91, %91 : vector<16x128xf32>
    %cst_31 = arith.constant dense<0.000000e+00> : vector<128xf32>
    %97 = vector.multi_reduction <add>, %96, %cst_31 [0] : vector<16x128xf32> to vector<128xf32>
    %98 = vector.shape_cast %97 : vector<128xf32> to vector<1x128xf32>
    %cst_32 = arith.constant 6.250000e-02 : f32
    %99 = vector.broadcast %cst_32 : f32 to vector<1x128xf32>
    %100 = arith.mulf %98, %99 : vector<1x128xf32>
    %c0_i32_33 = arith.constant 0 : i32
    %101 = vector.broadcast %c0_i32_33 : i32 to vector<2x1xi32>
    %102 = arith.cmpi eq, %27, %101 : vector<2x1xi32>
    %103 = vector.shape_cast %102 : vector<2x1xi1> to vector<2x1xi1>
    %104 = vector.broadcast %103 : vector<2x1xi1> to vector<2x128xi1>
    %105 = vector.shape_cast %95 : vector<1x128xf32> to vector<1x128xf32>
    %106 = vector.broadcast %105 : vector<1x128xf32> to vector<2x128xf32>
    %107 = vector.shape_cast %100 : vector<1x128xf32> to vector<1x128xf32>
    %108 = vector.broadcast %107 : vector<1x128xf32> to vector<2x128xf32>
    %109 = arith.select %104, %106, %108 : vector<2x128xi1>, vector<2x128xf32>
    %c0_34 = arith.constant 0 : index
    %c0_35 = arith.constant 0 : index
    %110 = vector.load %arg4[%c0_34, %c0_35] : memref<128x128xf32, #tpu.memory_space<vmem>>, vector<128x128xf32>
    %cst_36 = arith.constant dense<0.000000e+00> : vector<2x128xf32>
    %111 = tpu.matmul %109, %110, %cst_36 {dimension_numbers = #tpu.dot_dimension_numbers<[1], [0], [0], [1], [0, 0, 1, 1], [], []>} : vector<2x128xf32>, vector<128x128xf32>, vector<2x128xf32> -> vector<2x128xf32>
    %112 = vector.extract_strided_slice %111 {offsets = [0, 0], sizes = [1, 128], strides = [1, 1]} : vector<2x128xf32> to vector<1x128xf32>
    %113 = vector.extract_strided_slice %111 {offsets = [1, 0], sizes = [1, 128], strides = [1, 1]} : vector<2x128xf32> to vector<1x128xf32>
    %114 = arith.mulf %112, %112 : vector<1x128xf32>
    %115 = arith.subf %113, %114 : vector<1x128xf32>
    %cst_37 = arith.constant 9.99999974E-6 : f32
    %116 = vector.broadcast %cst_37 : f32 to vector<1x128xf32>
    %117 = arith.addf %115, %116 : vector<1x128xf32>
    %118 = math.rsqrt %117 : vector<1x128xf32>
    %119 = arith.mulf %4, %118 : vector<1x128xf32>
    %120 = vector.broadcast %119 : vector<1x128xf32> to vector<16x128xf32>
    %121 = arith.mulf %120, %91 : vector<16x128xf32>
    %122 = arith.mulf %119, %112 : vector<1x128xf32>
    %123 = arith.subf %5, %122 : vector<1x128xf32>
    %124 = vector.broadcast %123 : vector<1x128xf32> to vector<16x128xf32>
    %125 = arith.addf %121, %124 : vector<16x128xf32>
    %126 = arith.addf %125, %0 : vector<16x128xf32>
    %cst_38 = arith.constant 0.000000e+00 : f32
    %127 = vector.broadcast %cst_38 : f32 to vector<16x128xf32>
    %128 = arith.maximumf %126, %127 : vector<16x128xf32>
    %c0_39 = arith.constant 0 : index
    %c0_40 = arith.constant 0 : index
    %129 = vector.load %arg6[%c0_39, %c0_40] : memref<16x128xf32, #tpu.memory_space<vmem>>, vector<16x128xf32>
    tpu.vector_store %arg6[%c0_39, %c0_40], %128 {strides = array<i32>} : memref<16x128xf32, #tpu.memory_space<vmem>>, vector<16x128xf32>,
    return
  }
  func.func @transform_0(%arg0: i32) -> (i32, i32) {
    %c0_i32 = arith.constant 0 : i32
    %c0_i32_0 = arith.constant 0 : i32
    %c0_i32_1 = arith.constant 0 : i32
    return %c0_i32, %c0_i32_0 : i32, i32
  }
  func.func @transform_1(%arg0: i32) -> (i32, i32) {
    %c0_i32 = arith.constant 0 : i32
    %c0_i32_0 = arith.constant 0 : i32
    %c0_i32_1 = arith.constant 0 : i32
    return %c0_i32, %c0_i32_0 : i32, i32
  }
  func.func @transform_2(%arg0: i32) -> (i32, i32) {
    %c0_i32 = arith.constant 0 : i32
    %c0_i32_0 = arith.constant 0 : i32
    %c0_i32_1 = arith.constant 0 : i32
    return %c0_i32, %c0_i32_0 : i32, i32
  }
  func.func @transform_3(%arg0: i32) -> (i32, i32) {
    %c0_i32 = arith.constant 0 : i32
    %c0_i32_0 = arith.constant 0 : i32
    %c0_i32_1 = arith.constant 0 : i32
    return %c0_i32, %c0_i32_0 : i32, i32
  }
  func.func @transform_4(%arg0: i32) -> (i32, i32) {
    %c0_i32 = arith.constant 0 : i32
    %c0_i32_0 = arith.constant 0 : i32
    %c0_i32_1 = arith.constant 0 : i32
    return %c0_i32, %c0_i32_0 : i32, i32
  }
  func.func @transform_5(%arg0: i32) -> (i32, i32) {
    %c0_i32 = arith.constant 0 : i32
    %c0_i32_0 = arith.constant 0 : i32
    %c0_i32_1 = arith.constant 0 : i32
    return %c0_i32, %c0_i32_0 : i32, i32
  }
}

</mosaic_0001>

<bundles_post_ra>
// kernel: tpu_custom_call.1
= control target key start
LH: loop header
LB: loop body
LE: loop exit
PB: predicated region body
PF: predicated region fallthrough
CT: control target
= control target key end

     0   :  { %10 = vsyncpa [#allocation3], 0  ;;  %s1718_s0 = inlined_call_operand.hbm [shape: f32[16,128], index: 0, kind: input, shape index: {}]   ;;  %s1719_s1 = inlined_call_operand.hbm [shape: bf16[384,128], index: 1, kind: input, shape index: {}]   ;;  %s1720_s2 = inlined_call_operand.hbm [shape: bf16[384,128], index: 2, kind: input, shape index: {}]   ;;  %s1721_s3 = inlined_call_operand.hbm [shape: f32[128,128], index: 3, kind: input, shape index: {}]   ;;  %s1722_s4 = inlined_call_operand.vmem [shape: f32[4,128], index: 4, kind: input, shape index: {}]   ;;  %s1723_s5 = inlined_call_operand.hbm [shape: f32[16,128], index: 5, kind: output, shape index: {}]  }
   0x1   :  { %11 = vsyncpa [#allocation6], 0 }
   0x2   :  { %12 = vsyncpa [#allocation9], 0 }
   0x3   :  { %13 = vsyncpa [#allocation4], 0  ;;  %s1419_s18 = smov [#allocation5]  }
   0x4   :  { %s31_s19 = sshll.u32 %s1419_s18, 4  ;;  %s32_s19 = int_to_ptr.vmem [resolvable:$true] %s31_s19 }
   0x5   :  { %s1319_s20 = scalar_lea.vmem %s32_s19, 3072  ;;  %p1324_p1 = scmp.lt.s32.totalorder %s32_s19, %s32_s19 }
   0x6   :  { %p1320_p0 = scmp.ne.s32.totalorder %s32_s19, %s1319_s20  ;;  %p1325_p2 = scmp.lt.s32.totalorder %s1319_s20, %s1319_s20 }
   0x8   :  { %p1326_p3 = por %p1325_p2, %p1324_p1 }
   0xa   :  { %p1327_p4 = pnand %p1326_p3, %p1320_p0 }
   0xc   :  { %1330 = shalt.err (!%p1327_p4)
}
   0xd   :  { %s1420_s21 = smov 64   ;;  %s1421_s22 = smov 4  }
   0xe   :  { %37 = dma.hbm_to_vmem [thread:$0]  %s1719_s1, 3072, %s32_s19, [#allocation6], %s1420_s21, %s1420_s21, %s1421_s22  }
   0xf   :  { %s1422_s25 = smov [#allocation2]  }
  0x10   :  { %s19_s26 = sshll.u32 %s1422_s25, 4  ;;  %s20_s26 = int_to_ptr.vmem [resolvable:$true] %s19_s26 }
  0x11   :  { %s1339_s27 = scalar_lea.vmem %s20_s26, 256  ;;  %p1344_p6 = scmp.lt.s32.totalorder %s20_s26, %s20_s26 }
  0x12   :  { %p1340_p5 = scmp.ne.s32.totalorder %s20_s26, %s1339_s27  ;;  %p1345_p7 = scmp.lt.s32.totalorder %s1339_s27, %s1339_s27 }
  0x14   :  { %p1346_p8 = por %p1345_p7, %p1344_p6 }
  0x16   :  { %p1347_p9 = pnand %p1346_p8, %p1340_p5 }
  0x18   :  { %1350 = shalt.err (!%p1347_p9)
}
  0x19   :  { %s1423_s28 = smov 128   ;;  %s1424_s29 = smov 8  }
  0x1a   :  { %25 = dma.hbm_to_vmem [thread:$0]  %s1718_s0, 256, %s20_s26, [#allocation3], %s1423_s28, %s1423_s28, %s1424_s29  }
  0x1b   :  { %s1425_s1 = smov [#allocation7]   ;;  %s1426_s8 = smov [#allocation8]  }
  0x1c   :  { %s43_s7 = sshll.u32 %s1425_s1, 4  ;;  %s55_s9 = sshll.u32 %s1426_s8, 4  ;;  %s44_s7 = int_to_ptr.vmem [resolvable:$true] %s43_s7  ;;  %s56_s9 = int_to_ptr.vmem [resolvable:$true] %s55_s9 }
  0x1d   :  { %s1359_s10 = scalar_lea.vmem %s44_s7, 3072  ;;  %p1364_p11 = scmp.lt.s32.totalorder %s44_s7, %s44_s7 }
  0x1e   :  { %p1360_p10 = scmp.ne.s32.totalorder %s44_s7, %s1359_s10  ;;  %p1365_p12 = scmp.lt.s32.totalorder %s1359_s10, %s1359_s10 }
  0x20   :  { %p1366_p13 = por %p1365_p12, %p1364_p11 }
  0x22   :  { %p1367_p0 = pnand %p1366_p13, %p1360_p10 }
  0x24   :  { %1370 = shalt.err (!%p1367_p0)
}
  0x25   :  { %49 = dma.hbm_to_vmem [thread:$0]  %s1720_s2, 3072, %s44_s7, [#allocation6], %s1420_s21, %s1420_s21, %s1421_s22  }
  0x26   :  { %s1379_s0 = scalar_lea.vmem %s56_s9, 2048  ;;  %p1384_p2 = scmp.lt.s32.totalorder %s56_s9, %s56_s9 }
  0x27   :  { %p1380_p1 = scmp.ne.s32.totalorder %s56_s9, %s1379_s0  ;;  %p1385_p3 = scmp.lt.s32.totalorder %s1379_s0, %s1379_s0 }
  0x29   :  { %p1386_p4 = por %p1385_p3, %p1384_p2 }
  0x2b   :  { %p1387_p5 = pnand %p1386_p4, %p1380_p1 }
  0x2d   :  { %1390 = shalt.err (!%p1387_p5)
}
  0x2e   :  { %61 = dma.hbm_to_vmem [thread:$0]  %s1721_s3, 2048, %s56_s9, [#allocation9], %s1423_s28, %s1423_s28, %s1424_s29  }
  0x2f   :  { %1411 = dma.done.wait [#allocation3], 256  }
  0x30   :  { %1412 = vsyncadd [#allocation3], 4294967040 }
  0x31   :  { %1413 = dma.done.wait [#allocation6], 6144  }
  0x32   :  { %1414 = vsyncadd [#allocation6], 4294961152 }
  0x33   :  { %1415 = dma.done.wait [#allocation9], 2048  }
  0x34   :  { %1416 = vsyncadd [#allocation9], 4294965248  ;;  %v1427_v0 = vmov 0.0   ;;  %vm1428_vm0 = vmmov 0   ;;  %v1259_v1 = vld [vmem:[#allocation5 + $0x78] sm:$0xff]   ;;  %v1262_v4 = vld [vmem:[#allocation5 + $0x70] sm:$0xff]   ;;  %v80_v7 = vlaneseq }
  0x35   :  { %1138 = vmatprep.subr.bf16.mxu1 %v1427_v0  ;;  %1154 = vmatprep.mubr.msk.bf16.mxu1 %vm1428_vm0, %v1427_v0  ;;  %v1260_v2 = vld [vmem:[#allocation5 + $0xb8] sm:$0xff]   ;;  %v1263_v5 = vld [vmem:[#allocation5 + $0xb0] sm:$0xff]   ;;  %v1265_v8 = vld [vmem:[#allocation5 + $0x68] sm:$0xff]  }
  0x36   :  { %1042 = vmatprep.subr.bf16.mxu0 %v1259_v1  ;;  %v1261_v3 = vld [vmem:[#allocation5 + $0x38] sm:$0xff]   ;;  %1139 = vmatpush3.bf16.msra.mxu1 %v1260_v2  ;;  %v1264_v6 = vld [vmem:[#allocation5 + $0x30] sm:$0xff]   ;;  %v1266_v9 = vld [vmem:[#allocation5 + $0xa8] sm:$0xff]   ;;  %v1489_v12 = vshrl.u32 %v80_v7, 7 }
  0x37   :  { %1043 = vmatpush3.bf16.msra.mxu0 %v1261_v3  ;;  %1140 = vmatprep.subr.bf16.mxu1 %v1427_v0  ;;  %v1267_v10 = vld [vmem:[#allocation5 + $0x28] sm:$0xff]   ;;  %v1268_v11 = vld [vmem:[#allocation5 + $0x60] sm:$0xff]   ;;  %v1271_v15 = vld [vmem:[#allocation5 + $0x58] sm:$0xff]  }
  0x38   :  { %1044 = vmatprep.subr.bf16.mxu0 %v1262_v4  ;;  %v1269_v13 = vld [vmem:[#allocation5 + $0xa0] sm:$0xff]   ;;  %v82_v16 = vadd.s32 8, %v1489_v12  ;;  %v1272_v17 = vld [vmem:[#allocation5 + $0x98] sm:$0xff]   ;;  %v87_v18 = vand.u32 7, %v1489_v12  ;;  %v1274_v20 = vld [vmem:[#allocation5 + $0x50] sm:$0xff]   ;;  %vm124_vm5 = vcmp.lt.s32.totalorder %v1489_v12, 7 }
  0x39   :  { %v1270_v14 = vld [vmem:[#allocation5 + $0x20] sm:$0xff]   ;;  %v1273_v19 = vld [vmem:[#allocation5 + $0x18] sm:$0xff]   ;;  %v1275_v22 = vld [vmem:[#allocation5 + $0x90] sm:$0xff]   ;;  %vm113_vm7 = vcmp.lt.s32.totalorder %v1489_v12, 1  ;;  %vm428_vm9 = vcmp.eq.s32.totalorder %v1489_v12, 0 }
  0x3a   :  { %1141 = vmatpush3.bf16.msra.mxu1 %v1263_v5  ;;  %v94_v21 = vand.u32 7, %v82_v16  ;;  %v1276_v23 = vld [vmem:[#allocation5 + $0x10] sm:$0xff]   ;;  %vm1495_vm1 = vcmp.lt.s32.totalorder %v87_v18, 7  ;;  %v1277_v25 = vld [vmem:[#allocation5 + $0x48] sm:$0xff]   ;;  %vm1500_vm2 = vcmp.gt.s32.totalorder %v87_v18, 0  ;;  %v1280_v31 = vld [vmem:[#allocation5 + $0x40] sm:$0xff]  }
  0x3b   :  { %1045 = vmatpush3.bf16.msra.mxu0 %v1264_v6  ;;  %1142 = vmatprep.subr.bf16.mxu1 %v1427_v0  ;;  %v1278_v27 = vld [vmem:[#allocation5 + $0x88] sm:$0xff]   ;;  %v1513_v32 = vld [vmem:[#allocation2] sm:$0xff]  ;;  %v1515_v33 = vld [vmem:[#allocation2 + $0x8] sm:$0xff] }
  0x3c   :  { %1046 = vmatprep.subr.bf16.mxu0 %v1265_v8  ;;  %vm1504_vm3 = vcmp.lt.s32.totalorder %v94_v21, 7  ;;  %v1279_v29 = vld [vmem:[#allocation5 + $0x8] sm:$0xff]   ;;  %vm1508_vm4 = vcmp.gt.s32.totalorder %v94_v21, 0  ;;  %v1281_v34 = vld [vmem:[#allocation5 + $0x80] sm:$0xff]   ;;  %v111_v35 = vrot.slane %v1513_v32, 7  ;;  %v112_v36 = vrot.slane %v1515_v33, 7 }
  0x3d   :  { %vm1009_vm6 = vmpackc.low %vm1504_vm3, %vm1495_vm1  ;;  %v122_v37 = vrot.slane %v1513_v32, 1  ;;  %v123_v38 = vrot.slane %v1515_v33, 1  ;;  %v1282_v39 = vld [vmem:[#allocation5] sm:$0xff]   ;;  %v134_v40 = vpack.c.bf16 %v1515_v33, %v1513_v32  ;;  %v1555_v47 = vld [vmem:[#allocation8 + $0x78] sm:$0xff] }
  0x3e   :  { %1143 = vmatpush3.bf16.msra.mxu1 %v1266_v9  ;;  %vm1006_vm8 = vmpackc.low %vm1508_vm4, %vm1500_vm2  ;;  %v114_v43 = vsel %vm113_vm7, %v111_v35, %v112_v36  ;;  %v115_v44 = vsel %vm113_vm7, %v112_v36, %v111_v35  ;;  %v1559_v48 = vld [vmem:[#allocation8 + $0x70] sm:$0xff]  ;;  %v1563_v49 = vld [vmem:[#allocation8 + $0x68] sm:$0xff] }
  0x3f   :  { %1047 = vmatpush3.bf16.msra.mxu0 %v1267_v10  ;;  %1144 = vmatprep.subr.bf16.mxu1 %v1427_v0  ;;  %v125_v41 = vsel %vm124_vm5, %v122_v37, %v123_v38  ;;  %v126_v42 = vsel %vm124_vm5, %v123_v38, %v122_v37  ;;  %v1007_v46 = vpack.c.bf16 %v114_v43, %v115_v44  ;;  %v1567_v50 = vld [vmem:[#allocation8 + $0x60] sm:$0xff]  ;;  %v1571_v51 = vld [vmem:[#allocation8 + $0x58] sm:$0xff]  ;;  %v1575_v52 = vld [vmem:[#allocation8 + $0x50] sm:$0xff] }
  0x40   :  { %1048 = vmatprep.subr.bf16.mxu0 %v1268_v11  ;;  %360 = vmatprep.mubr.bf16.mxu0 %v134_v40  ;;  %v1010_v45 = vpack.c.bf16 %v126_v42, %v125_v41  ;;  %v1579_v53 = vld [vmem:[#allocation8 + $0x48] sm:$0xff]  ;;  %v1583_v54 = vld [vmem:[#allocation8 + $0x40] sm:$0xff]  ;;  %v1587_v55 = vld [vmem:[#allocation8 + $0x38] sm:$0xff] }
  0x41   :  { %v1591_v56 = vld [vmem:[#allocation8 + $0x30] sm:$0xff]  ;;  %v1594_v57 = vld [vmem:[#allocation8 + $0x28] sm:$0xff]  ;;  %v1597_v58 = vld [vmem:[#allocation8 + $0x20] sm:$0xff] }
  0x42   :  { %1145 = vmatpush3.bf16.msra.mxu1 %v1269_v13  ;;  %v1601_v59 = vld [vmem:[#allocation8 + $0x18] sm:$0xff]  ;;  %v1605_v60 = vld [vmem:[#allocation8 + $0x10] sm:$0xff]  ;;  %v1609_v61 = vld [vmem:[#allocation8 + $0x8] sm:$0xff] }
  0x43   :  { %1049 = vmatpush3.bf16.msra.mxu0 %v1270_v14  ;;  %1146 = vmatprep.subr.bf16.mxu1 %v1427_v0  ;;  %v1613_v62 = vld [vmem:[#allocation8] sm:$0xff]  ;;  %v1283_v38 = vld [vmem:[#allocation7 + $0x78] sm:$0xff]   ;;  %v1286_v41 = vld [vmem:[#allocation7 + $0x70] sm:$0xff]  }
  0x44   :  { %1050 = vmatprep.subr.bf16.mxu0 %v1271_v15  ;;  %v1285_v40 = vld [vmem:[#allocation7 + $0xb8] sm:$0xff]   ;;  %v1287_v42 = vld [vmem:[#allocation7 + $0x30] sm:$0xff]   ;;  %v1289_v44 = vld [vmem:[#allocation7 + $0x68] sm:$0xff]  }
  0x45   :  { %v1288_v43 = vld [vmem:[#allocation7 + $0xb0] sm:$0xff]  }
  0x46   :  { %1147 = vmatpush3.bf16.msra.mxu1 %v1272_v17 }
  0x47   :  { %1051 = vmatpush3.bf16.msra.mxu0 %v1273_v19  ;;  %1148 = vmatprep.subr.bf16.mxu1 %v1427_v0 }
  0x48   :  { %1052 = vmatprep.subr.bf16.mxu0 %v1274_v20 }
  0x4a   :  { %1149 = vmatpush3.bf16.msra.mxu1 %v1275_v22 }
  0x4b   :  { %1053 = vmatpush3.bf16.msra.mxu0 %v1276_v23  ;;  %1150 = vmatprep.subr.bf16.mxu1 %v1427_v0 }
  0x4c   :  { %1054 = vmatprep.subr.bf16.mxu0 %v1277_v25 }
  0x4e   :  { %1151 = vmatpush3.bf16.msra.mxu1 %v1278_v27 }
  0x4f   :  { %1055 = vmatpush3.bf16.msra.mxu0 %v1279_v29  ;;  %1152 = vmatprep.subr.bf16.mxu1 %v1427_v0 }
  0x50   :  { %1056 = vmatprep.subr.bf16.mxu0 %v1280_v31 }
  0x52   :  { %1153 = vmatpush3.bf16.msra.mxu1 %v1281_v34 }
  0x53   :  { %1057 = vmatpush3.bf16.msra.mxu0 %v1282_v39  ;;  %v1284_v39 = vld [vmem:[#allocation7 + $0x38] sm:$0xff]   ;;  %1090 = vmatprep.subr.bf16.mxu1 %v1283_v38  ;;  %v542_v38 = vsub.s32 1, %v1489_v12 }
  0x54   :  { %1158 = vmatprep.subr.mxu0 %v1427_v0 }
  0x55   :  { %1155 = vmatmul.mubr.msk.bf16.vlgmr.msra.gmra.mxu1 %vm1009_vm6, %v1010_v45  ;;  %v1290_v45 = vld [vmem:[#allocation7 + $0x28] sm:$0xff]  }
  0x56   :  { %1008 = vmatmul.mubr.msk.bf16.vlgmr.msra.gmra.mxu0 %vm1006_vm8, %v1007_v46  ;;  %1091 = vmatpush3.bf16.msra.mxu1 %v1284_v39  ;;  %v1291_v46 = vld [vmem:[#allocation7 + $0xa8] sm:$0xff]  }
  0x57   :  { %1190 = vmatprep.mubr.msk.f32.mxu0 %vm1428_vm0, %v1427_v0  ;;  %1159 = vmatpush3.msra.mxu0 %v1555_v47 }
  0x58   :  { %1160 = vmatprep.subr.mxu0 %v1427_v0  ;;  %1092 = vmatprep.subr.bf16.mxu1 %v1286_v41 }
  0x59   :  { %1161 = vmatpush3.msra.mxu0 %v1559_v48 }
  0x5a   :  { %1162 = vmatprep.subr.mxu0 %v1427_v0  ;;  %1093 = vmatpush3.bf16.msra.mxu1 %v1287_v42 }
  0x5b   :  { %1163 = vmatpush3.msra.mxu0 %v1563_v49  ;;  %1094 = vmatprep.subr.bf16.mxu1 %v1289_v44 }
  0x5c   :  { %1164 = vmatprep.subr.mxu0 %v1427_v0 }
  0x5d   :  { %1165 = vmatpush3.msra.mxu0 %v1567_v50 }
  0x5e   :  { %1166 = vmatprep.subr.mxu0 %v1427_v0  ;;  %1095 = vmatpush3.bf16.msra.mxu1 %v1290_v45 }
  0x5f   :  { %1167 = vmatpush3.msra.mxu0 %v1571_v51 }
  0x60   :  { %1168 = vmatprep.subr.mxu0 %v1427_v0 }
  0x61   :  { %1169 = vmatpush3.msra.mxu0 %v1575_v52 }
  0x62   :  { %1170 = vmatprep.subr.mxu0 %v1427_v0 }
  0x63   :  { %1171 = vmatpush3.msra.mxu0 %v1579_v53 }
  0x64   :  { %1172 = vmatprep.subr.mxu0 %v1427_v0 }
  0x65   :  { %1173 = vmatpush3.msra.mxu0 %v1583_v54 }
  0x66   :  { %1174 = vmatprep.subr.mxu0 %v1427_v0 }
  0x67   :  { %1175 = vmatpush3.msra.mxu0 %v1587_v55 }
  0x68   :  { %1176 = vmatprep.subr.mxu0 %v1427_v0 }
  0x69   :  { %1177 = vmatpush3.msra.mxu0 %v1591_v56 }
  0x6a   :  { %1178 = vmatprep.subr.mxu0 %v1427_v0 }
  0x6b   :  { %1179 = vmatpush3.msra.mxu0 %v1594_v57 }
  0x6c   :  { %1180 = vmatprep.subr.mxu0 %v1427_v0 }
  0x6d   :  { %1181 = vmatpush3.msra.mxu0 %v1597_v58 }
  0x6e   :  { %1182 = vmatprep.subr.mxu0 %v1427_v0 }
  0x6f   :  { %1183 = vmatpush3.msra.mxu0 %v1601_v59 }
  0x70   :  { %1184 = vmatprep.subr.mxu0 %v1427_v0 }
  0x71   :  { %1185 = vmatpush3.msra.mxu0 %v1605_v60 }
  0x72   :  { %1186 = vmatprep.subr.mxu0 %v1427_v0 }
  0x73   :  { %1187 = vmatpush3.msra.mxu0 %v1609_v61 }
  0x74   :  { %1188 = vmatprep.subr.mxu0 %v1427_v0 }
  0x75   :  { %1189 = vmatpush3.msra.mxu0 %v1613_v62 }
  0x76   :  { %1193 = vmatprep.subr.bf16.mxu0 %v1427_v0 }
 0x115   :  { %v403_v63 = vpop.f32.mrf.mxu1 }
 0x116   :  { %v1058_v1 = vpop.f32.mrf.mxu0 }
 0x117   :  { %v1156_v2 = vpop.f32.mrf.mxu1 }
 0x118   :  { %v1059_v3 = vpop.f32.mrf.mxu0  ;;  %v1294_v2 = vld [vmem:[#allocation7 + $0xa0] sm:$0xff]  }
 0x119   :  { %v1060_v4 = vadd.f32 %v1059_v3, %v1058_v1  ;;  %v406_v5 = vpop.f32.mrf.mxu1  ;;  %v1293_v1 = vld [vmem:[#allocation7 + $0x20] sm:$0xff]   ;;  %v1295_v3 = vld [vmem:[#allocation7 + $0x58] sm:$0xff]  }
 0x11a   :  { %v1061_v6 = vpop.f32.mrf.mxu0 }
 0x11b   :  { %v1157_v7 = vpop.f32.mrf.mxu1  ;;  %v1619_v9 = vadd.f32 %v1060_v4, %v403_v63  ;;  %v1292_v63 = vld [vmem:[#allocation7 + $0x60] sm:$0xff]   ;;  %v1296_v4 = vld [vmem:[#allocation7 + $0x18] sm:$0xff]  }
 0x11c   :  { %v1062_v8 = vpop.f32.mrf.mxu0  ;;  %1096 = vmatprep.subr.bf16.mxu1 %v1292_v63  ;;  %v1299_v7 = vld [vmem:[#allocation7 + $0x10] sm:$0xff]  }
 0x11d   :  { %v1063_v10 = vadd.f32 %v1062_v8, %v1061_v6  ;;  %v418_v13 = vmul.f32 %v1619_v9, %v1619_v9  ;;  %1097 = vmatpush3.bf16.msra.mxu1 %v1293_v1  ;;  %v1298_v6 = vld [vmem:[#allocation7 + $0x50] sm:$0xff]  }
 0x11e   :  { %1098 = vmatprep.subr.bf16.mxu1 %v1295_v3  ;;  %v1300_v8 = vld [vmem:[#allocation7 + $0x90] sm:$0xff]  }
 0x11f   :  { %v1621_v11 = vadd.f32 %v1063_v10, %v406_v5  ;;  %v1297_v5 = vld [vmem:[#allocation7 + $0x98] sm:$0xff]   ;;  %v1301_v10 = vld [vmem:[#allocation7 + $0x48] sm:$0xff]  }
 0x121   :  { %v410_v14 = vadd.f32 %v1621_v11, %v1619_v9  ;;  %v419_v15 = vmul.f32 %v1621_v11, %v1621_v11  ;;  %1099 = vmatpush3.bf16.msra.mxu1 %v1296_v4 }
 0x122   :  { %1100 = vmatprep.subr.bf16.mxu1 %v1298_v6 }
 0x123   :  { %v411_v16 = vrot.slane %v410_v14, 4  ;;  %v420_v17 = vadd.f32 %v419_v15, %v418_v13  ;;  %v1302_v13 = vld [vmem:[#allocation7 + $0x8] sm:$0xff]   ;;  %v1304_v15 = vld [vmem:[#allocation7 + $0x40] sm:$0xff]  }
 0x125   :  { %v412_v18 = vadd.f32 %v411_v16, %v410_v14  ;;  %v421_v19 = vrot.slane %v420_v17, 4  ;;  %1101 = vmatpush3.bf16.msra.mxu1 %v1299_v7  ;;  %v1303_v14 = vld [vmem:[#allocation7 + $0x88] sm:$0xff]   ;;  %v1305_v16 = vld [vmem:[#allocation7] sm:$0xff]  }
 0x126   :  { %1102 = vmatprep.subr.bf16.mxu1 %v1301_v10 }
 0x127   :  { %v413_v20 = vrot.slane %v412_v18, 2  ;;  %v422_v21 = vadd.f32 %v421_v19, %v420_v17  ;;  %v1306_v17 = vld [vmem:[#allocation7 + $0x80] sm:$0xff]  }
 0x129   :  { %v414_v22 = vadd.f32 %v413_v20, %v412_v18  ;;  %v423_v23 = vrot.slane %v422_v21, 2  ;;  %1103 = vmatpush3.bf16.msra.mxu1 %v1302_v13 }
 0x12a   :  { %1104 = vmatprep.subr.bf16.mxu1 %v1304_v15 }
 0x12b   :  { %v415_v25 = vrot.slane %v414_v22, 1  ;;  %v424_v27 = vadd.f32 %v423_v23, %v422_v21 }
 0x12d   :  { %v416_v29 = vadd.f32 %v415_v25, %v414_v22  ;;  %v425_v31 = vrot.slane %v424_v27, 1  ;;  %1105 = vmatpush3.bf16.msra.mxu1 %v1305_v16 }
 0x12e   :  { %1213 = vmatprep.subr.mxu1 %v1427_v0 }
 0x12f   :  { %v426_v34 = vadd.f32 %v425_v31, %v424_v27  ;;  %v417_v35 = vmul.f32 0.0625, %v416_v29  ;;  %v1645_v27 = vld [vmem:[%s1722_s4] sm:$0xf]  ;;  %s1429_s4 = smov [#allocation10]  }
 0x130   :  { %s968_s15 = sshll.u32 %s1429_s4, 4  ;;  %s969_s15 = int_to_ptr.vmem [resolvable:$true] %s968_s15 }
 0x131   :  { %v427_v36 = vmul.f32 0.0625, %v426_v34  ;;  %v531_v34 = vsub.s32 0, %v1489_v12  ;;  %s1391_s16 = scalar_lea.vmem %s969_s15, 256  ;;  %p1396_p7 = scmp.lt.s32.totalorder %s969_s15, %s969_s15 }
 0x132   :  { %p1392_p6 = scmp.ne.s32.totalorder %s969_s15, %s1391_s16  ;;  %p1397_p8 = scmp.lt.s32.totalorder %s1391_s16, %s1391_s16 }
 0x133   :  { %v431_v37 = vsel %vm428_vm9, %v417_v35, %v427_v36 }
 0x134   :  { %1191 = vmatmul.mubr.f32.vlgmr.msra.gmra.mxu0 %v431_v37  ;;  %p1398_p9 = por %p1397_p8, %p1396_p7 }
 0x135   :  { %1209 = vmatprep.mubr.msk.bf16.mxu0 %vm1428_vm0, %v1427_v0  ;;  %1194 = vmatpush3.bf16.msra.mxu0 %v1285_v40 }
 0x136   :  { %1195 = vmatprep.subr.bf16.mxu0 %v1427_v0  ;;  %p1399_p10 = pnand %p1398_p9, %p1392_p6 }
 0x139   :  { %1196 = vmatpush3.bf16.msra.mxu0 %v1288_v43 }
 0x13a   :  { %1197 = vmatprep.subr.bf16.mxu0 %v1427_v0 }
 0x13d   :  { %1198 = vmatpush3.bf16.msra.mxu0 %v1291_v46 }
 0x13e   :  { %1199 = vmatprep.subr.bf16.mxu0 %v1427_v0 }
 0x141   :  { %1200 = vmatpush3.bf16.msra.mxu0 %v1294_v2 }
 0x142   :  { %1201 = vmatprep.subr.bf16.mxu0 %v1427_v0 }
 0x145   :  { %1202 = vmatpush3.bf16.msra.mxu0 %v1297_v5 }
 0x146   :  { %1203 = vmatprep.subr.bf16.mxu0 %v1427_v0 }
 0x149   :  { %1204 = vmatpush3.bf16.msra.mxu0 %v1300_v8 }
 0x14a   :  { %1205 = vmatprep.subr.bf16.mxu0 %v1427_v0 }
 0x14d   :  { %1206 = vmatpush3.bf16.msra.mxu0 %v1303_v14 }
 0x14e   :  { %1207 = vmatprep.subr.bf16.mxu0 %v1427_v0 }
 0x151   :  { %1208 = vmatpush3.bf16.msra.mxu0 %v1306_v17 }
 0x1f4   :  { %v514_v18 = vpop.f32.mrf.mxu0 }
 0x1f5   :  { %v518_v19 = vmul.f32 %v514_v18, %v514_v18 }
 0x1f6   :  { %v1192_v20 = vpop.f32.mrf.mxu0 }
 0x1f7   :  { %v520_v21 = vrot.slane %v518_v19, 7 }
 0x1f9   :  { %v522_v22 = vsub.f32 %v514_v18, %v520_v21 }
 0x1fb   :  { %v523_v23 = vadd.f32 1e-05, %v522_v22 }
 0x1fd   :  { %1307 = vrsqrt.f32 %v523_v23 }
 0x20a   :  { %v1308_v25 = vpop.eup %1307 }
 0x20b   :  { %v526_v29 = vrot.slane %v1308_v25, 1 }
 0x20d   :  { %v528_v31 = vmul.f32 %v526_v29, %v1645_v27 }
 0x20f   :  { %v535_v35 = vmul.f32 %v528_v31, %v514_v18  ;;  %v532_v36 = vrot.slane %v528_v31, %v531_v34 }
 0x211   :  { %v537_v37 = vrot.slane %v535_v35, 7  ;;  %v533_v40 = vmul.f32 %v532_v36, %v1619_v9  ;;  %v534_v41 = vmul.f32 %v532_v36, %v1621_v11 }
 0x213   :  { %v539_v39 = vsub.f32 %v1645_v27, %v537_v37 }
 0x215   :  { %v543_v42 = vrot.slane %v539_v39, %v542_v38  ;;  %v939_v38 = vsub.s32 2, %v1489_v12 }
 0x217   :  { %v544_v43 = vadd.f32 %v543_v42, %v533_v40  ;;  %v545_v44 = vadd.f32 %v543_v42, %v534_v41 }
 0x219   :  { %v546_v45 = vmax.f32 %v544_v43, 0.0  ;;  %v547_v46 = vmax.f32 %v545_v44, 0.0  ;;  %v953_v43 = vsub.s32 3, %v1489_v12 }
 0x21b   :  { %v548_v63 = vrot.slane %v546_v45, 7  ;;  %v549_v1 = vrot.slane %v547_v46, 7  ;;  %v554_v2 = vrot.slane %v546_v45, 1  ;;  %v555_v3 = vrot.slane %v547_v46, 1 }
 0x21c   :  { %v561_v4 = vpack.c.bf16 %v547_v46, %v546_v45 }
 0x21d   :  { %v550_v5 = vsel %vm113_vm7, %v548_v63, %v549_v1  ;;  %v551_v6 = vsel %vm113_vm7, %v549_v1, %v548_v63  ;;  %v556_v9 = vsel %vm124_vm5, %v554_v2, %v555_v3  ;;  %v557_v11 = vsel %vm124_vm5, %v555_v3, %v554_v2 }
 0x21e   :  { %787 = vmatprep.mubr.bf16.mxu1 %v561_v4  ;;  %v1037_v7 = vpack.c.bf16 %v550_v5, %v551_v6  ;;  %v1040_v8 = vpack.c.bf16 %v557_v11, %v556_v9 }
 0x220   :  { %1038 = vmatmul.mubr.msk.bf16.vlgmr.msra.gmra.mxu1 %vm1006_vm8, %v1037_v7  ;;  %1210 = vmatmul.mubr.msk.bf16.vlgmr.msra.gmra.mxu0 %vm1009_vm6, %v1040_v8 }
 0x221   :  { %1214 = vmatpush3.msra.mxu1 %v1555_v47  ;;  %1245 = vmatprep.mubr.msk.f32.mxu1 %vm1428_vm0, %v1427_v0 }
 0x222   :  { %1215 = vmatprep.subr.mxu1 %v1427_v0 }
 0x223   :  { %1216 = vmatpush3.msra.mxu1 %v1559_v48 }
 0x224   :  { %1217 = vmatprep.subr.mxu1 %v1427_v0 }
 0x225   :  { %1218 = vmatpush3.msra.mxu1 %v1563_v49 }
 0x226   :  { %1219 = vmatprep.subr.mxu1 %v1427_v0 }
 0x227   :  { %1220 = vmatpush3.msra.mxu1 %v1567_v50 }
 0x228   :  { %1221 = vmatprep.subr.mxu1 %v1427_v0 }
 0x229   :  { %1222 = vmatpush3.msra.mxu1 %v1571_v51 }
 0x22a   :  { %1223 = vmatprep.subr.mxu1 %v1427_v0 }
 0x22b   :  { %1224 = vmatpush3.msra.mxu1 %v1575_v52 }
 0x22c   :  { %1225 = vmatprep.subr.mxu1 %v1427_v0 }
 0x22d   :  { %1226 = vmatpush3.msra.mxu1 %v1579_v53 }
 0x22e   :  { %1227 = vmatprep.subr.mxu1 %v1427_v0 }
 0x22f   :  { %1228 = vmatpush3.msra.mxu1 %v1583_v54 }
 0x230   :  { %1229 = vmatprep.subr.mxu1 %v1427_v0 }
 0x231   :  { %1230 = vmatpush3.msra.mxu1 %v1587_v55 }
 0x232   :  { %1231 = vmatprep.subr.mxu1 %v1427_v0 }
 0x233   :  { %1232 = vmatpush3.msra.mxu1 %v1591_v56 }
 0x234   :  { %1233 = vmatprep.subr.mxu1 %v1427_v0 }
 0x235   :  { %1234 = vmatpush3.msra.mxu1 %v1594_v57 }
 0x236   :  { %1235 = vmatprep.subr.mxu1 %v1427_v0 }
 0x237   :  { %1236 = vmatpush3.msra.mxu1 %v1597_v58 }
 0x238   :  { %1237 = vmatprep.subr.mxu1 %v1427_v0 }
 0x239   :  { %1238 = vmatpush3.msra.mxu1 %v1601_v59 }
 0x23a   :  { %1239 = vmatprep.subr.mxu1 %v1427_v0 }
 0x23b   :  { %1240 = vmatpush3.msra.mxu1 %v1605_v60 }
 0x23c   :  { %1241 = vmatprep.subr.mxu1 %v1427_v0 }
 0x23d   :  { %1242 = vmatpush3.msra.mxu1 %v1609_v61 }
 0x23e   :  { %1243 = vmatprep.subr.mxu1 %v1427_v0 }
 0x23f   :  { %1244 = vmatpush3.msra.mxu1 %v1613_v62 }
 0x2e0   :  { %v1106_v24 = vpop.f32.mrf.mxu1  ;;  %v830_v26 = vpop.f32.mrf.mxu0 }
 0x2e2   :  { %v1107_v28 = vpop.f32.mrf.mxu1  ;;  %v1211_v30 = vpop.f32.mrf.mxu0 }
 0x2e3   :  { %v1108_v47 = vadd.f32 %v1107_v28, %v1106_v24 }
 0x2e4   :  { %v1109_v48 = vpop.f32.mrf.mxu1  ;;  %v833_v49 = vpop.f32.mrf.mxu0 }
 0x2e5   :  { %v831_v52 = vadd.f32 %v1108_v47, %v830_v26 }
 0x2e6   :  { %v1110_v50 = vpop.f32.mrf.mxu1  ;;  %v1212_v51 = vpop.f32.mrf.mxu0 }
 0x2e7   :  { %v1111_v53 = vadd.f32 %v1110_v50, %v1109_v48  ;;  %v845_v55 = vmul.f32 %v831_v52, %v831_v52 }
 0x2e9   :  { %v834_v54 = vadd.f32 %v1111_v53, %v833_v49 }
 0x2eb   :  { %v837_v56 = vadd.f32 %v834_v54, %v831_v52  ;;  %v846_v57 = vmul.f32 %v834_v54, %v834_v54 }
 0x2ed   :  { %v838_v58 = vrot.slane %v837_v56, 4  ;;  %v847_v59 = vadd.f32 %v846_v57, %v845_v55 }
 0x2ef   :  { %v839_v0 = vadd.f32 %v838_v58, %v837_v56  ;;  %v848_v60 = vrot.slane %v847_v59, 4 }
 0x2f1   :  { %v840_v61 = vrot.slane %v839_v0, 2  ;;  %v849_v62 = vadd.f32 %v848_v60, %v847_v59 }
 0x2f3   :  { %v841_v10 = vadd.f32 %v840_v61, %v839_v0  ;;  %v850_v13 = vrot.slane %v849_v62, 2 }
 0x2f5   :  { %v842_v14 = vrot.slane %v841_v10, 1  ;;  %v851_v15 = vadd.f32 %v850_v13, %v849_v62 }
 0x2f7   :  { %v843_v16 = vadd.f32 %v842_v14, %v841_v10  ;;  %v852_v17 = vrot.slane %v851_v15, 1 }
 0x2f9   :  { %v853_v18 = vadd.f32 %v852_v17, %v851_v15  ;;  %v844_v19 = vmul.f32 0.0625, %v843_v16 }
 0x2fb   :  { %v854_v20 = vmul.f32 0.0625, %v853_v18 }
 0x2fd   :  { %v855_v21 = vsel %vm428_vm9, %v844_v19, %v854_v20 }
 0x2fe   :  { %1246 = vmatmul.mubr.f32.vlgmr.msra.gmra.mxu1 %v855_v21 }
 0x3be   :  { %v922_v22 = vpop.f32.mrf.mxu1 }
 0x3bf   :  { %v926_v23 = vmul.f32 %v922_v22, %v922_v22  ;;  %v944_v39 = vrot.slane %v922_v22, 6 }
 0x3c0   :  { %v1247_v25 = vpop.f32.mrf.mxu1 }
 0x3c1   :  { %v928_v29 = vrot.slane %v926_v23, 7 }
 0x3c3   :  { %v930_v31 = vsub.f32 %v922_v22, %v928_v29 }
 0x3c5   :  { %v931_v34 = vadd.f32 1e-05, %v930_v31 }
 0x3c7   :  { %1309 = vrsqrt.f32 %v931_v34 }
 0x3d4   :  { %v1310_v35 = vpop.eup %1309 }
 0x3d5   :  { %v934_v36 = vrot.slane %v1310_v35, 7 }
 0x3d7   :  { %v936_v37 = vmul.f32 %v934_v36, %v1645_v27 }
 0x3d9   :  { %v946_v40 = vmul.f32 %v944_v39, %v936_v37  ;;  %v940_v41 = vrot.slane %v936_v37, %v939_v38 }
 0x3db   :  { %v948_v42 = vrot.slane %v946_v40, 7  ;;  %v941_v45 = vmul.f32 %v940_v41, %v831_v52  ;;  %v942_v46 = vmul.f32 %v940_v41, %v834_v54 }
 0x3dd   :  { %v950_v44 = vsub.f32 %v1645_v27, %v948_v42 }
 0x3df   :  { %v954_v63 = vrot.slane %v950_v44, %v953_v43 }
 0x3e1   :  { %v955_v1 = vadd.f32 %v954_v63, %v941_v45  ;;  %v956_v2 = vadd.f32 %v954_v63, %v942_v46 }
 0x3e3   :  { %v957_v3 = vadd.f32 %v955_v1, %v1513_v32  ;;  %v958_v4 = vadd.f32 %v956_v2, %v1515_v33 }
 0x3e5   :  { %v959_v5 = vmax.f32 %v957_v3, 0.0  ;;  %v960_v6 = vmax.f32 %v958_v4, 0.0 }
 0x3e7   :  { %961 = vst [vmem:[#allocation10] sm:$0xff] %v959_v5  ;;  %962 = vst [vmem:[#allocation10 + $0x8] sm:$0xff] %v960_v6 }
 0x3e8   :  { %1402 = shalt.err (!%p1399_p10)
}
 0x3e9   :  { %974 = dma.vmem_to_hbm [thread:$0]  %s969_s15, 256, %s1723_s5, [#allocation4], %s1423_s28, %s1423_s28, %s1424_s29  }
 0x3ea   :  { %1417 = dma.done.wait [#allocation4], 256  }
 0x3eb   :  { %1418 = vsyncadd [#allocation4], 4294967040 }
 0x3ec   :  { %978 = vsyncpa [#allocation3], 1 }
 0x3ed   :  { %979 = vsyncpa [#allocation6], 1 }
 0x3ee   :  { %980 = vsyncpa [#allocation9], 1 }
 0x3ef   :  { %981 = vsyncpa [#allocation4], 1 }

</bundles_post_ra>
